<compile_context>
chip_gen: v6e
topology: v6e:2x2x1
jax: 0.10.0
libtpu: 0.0.40
codegen_flags: <defaults>
</compile_context>

<pallas_src>
import jax
import jax.numpy as jnp
from jax.experimental import pallas as pl
from jax.experimental.pallas import tpu as pltpu


def _avgpool2x2_kernel(x_ref, p_ref, o_ref):
    # x_ref: (TR, 2*We)  -- each row is [even-H row (We) | odd-H row (We)]
    # p_ref: (We, Wo)    -- 0/1 pooling matrix, P[k, j] = 1 iff k // 2 == j
    # o_ref: (TR, Wo)
    we = p_ref.shape[0]
    a = x_ref[:, pl.ds(0, we)].astype(jnp.float32)   # even-H rows
    b = x_ref[:, pl.ds(we, we)].astype(jnp.float32)  # odd-H rows
    s = a + b                                        # H-pair sum (VPU)
    # W-pair sum + lane compaction on the idle MXU: (TR, We) @ (We, Wo)
    pooled = jnp.dot(s, p_ref[...], preferred_element_type=jnp.float32)
    o_ref[...] = (pooled * 0.25).astype(o_ref.dtype)


def _pick_row_block(R, bytes_per_row, budget):
    """Rows per grid step: biggest block in budget, multiple of 8 (or full R),
    >= 4 grid steps when possible (v7x megacore + pipelining), and preferring
    a divisor of R to avoid a masked tail block."""
    tr_budget = max((int(budget // max(bytes_per_row, 1)) // 8) * 8, 8)
    tr_par = ((R // 4) // 8) * 8          # cap so there are >= 4 blocks
    tr = min(tr_budget, tr_par) if tr_par >= 8 else tr_budget
    if tr >= R:
        return R                          # single full-extent block (small R)
    if R % 8 == 0:
        cand = tr
        lo = max(8, tr // 2)
        while cand >= lo:
            if R % cand == 0:
                return cand
            cand -= 8
    return tr


def avg_pool2d_2x2(x):
    """x: (N, C, H, W) -> (N, C, H//2, W//2), matching nn.AvgPool2d(2, 2)."""
    N, C, H, W = x.shape
    Ho, Wo = H // 2, W // 2
    if Ho == 0 or Wo == 0:
        return jnp.zeros((N, C, Ho, Wo), x.dtype)
    He, We = 2 * Ho, 2 * Wo
    if (He, We) != (H, W):                # PyTorch floors odd spatial dims
        x = x[:, :, :He, :We]

    R = N * C * Ho                        # one output row per H-pair
    L = 2 * We                            # merged H-pair row length
    xv = x.reshape(R, L)                  # free row-major reshape (no data movement)

    # 0/1 pooling matrix for the W-pair sum (fetched into VMEM once).
    P = (jax.lax.broadcasted_iota(jnp.int32, (We, Wo), 0) // 2
         == jax.lax.broadcasted_iota(jnp.int32, (We, Wo), 1)).astype(jnp.float32)

    # VMEM-aware block sizing (v7x: 64 MiB physical; v5e/v6e: 128 MiB).
    try:
        cap = int(getattr(pltpu.get_tpu_info(), "vmem_capacity_bytes", 64 << 20))
    except Exception:
        cap = 64 << 20
    vmem_limit = min((cap * 3) // 4, 96 << 20)   # 48 MiB on v7x, 96 MiB on v5e/v6e

    itemsize = jnp.dtype(x.dtype).itemsize
    in_row = L * itemsize
    out_row = Wo * itemsize
    tmp_row = (3 * We + Wo) * 4                  # f32 intermediates (a, b, s, pooled)
    p_bytes = We * Wo * 4                        # resident pooling matrix
    bytes_per_row = 2 * (in_row + out_row) + tmp_row   # 2x = double buffering
    budget = max(vmem_limit // 2 - p_bytes, 8 * bytes_per_row)
    # TODO(synk): for extremely wide W (We*Wo*4 approaching VMEM) the resident
    # pooling matrix would need a Wo grid axis; not needed for typical shapes.

    TR = _pick_row_block(R, bytes_per_row, budget)
    n_blocks = pl.cdiv(R, TR)

    out = pl.pallas_call(
        _avgpool2x2_kernel,
        out_shape=jax.ShapeDtypeStruct((R, Wo), x.dtype),
        grid_spec=pltpu.PrefetchScalarGridSpec(
            num_scalar_prefetch=0,
            grid=(n_blocks,),
            in_specs=[
                pl.BlockSpec((TR, L), lambda i: (i, 0)),      # contiguous row slab
                pl.BlockSpec((We, Wo), lambda i: (0, 0)),     # pooling matrix, fetched once
            ],
            out_specs=pl.BlockSpec((TR, Wo), lambda i: (i, 0)),
        ),
        compiler_params=pltpu.CompilerParams(
            dimension_semantics=("parallel",),
            vmem_limit_bytes=int(vmem_limit),
        ),
    )(xv, P)

    return out.reshape(N, C, Ho, Wo)             # free reshape back to NCHW


if __name__ == "__main__":
    key = jax.random.PRNGKey(0)
    N, C, H, W = 2, 4, 16, 16
    x = jax.random.normal(key, (N, C, H, W), dtype=jnp.float32)

    out = jax.jit(avg_pool2d_2x2)(x)
    out = jax.block_until_ready(out)

    # reference check (pure JAX)
    ref = x.reshape(N, C, H // 2, 2, W // 2, 2).mean(axis=(3, 5))
    assert out.shape == (N, C, H // 2, W // 2), out.shape
    assert jnp.allclose(out, ref, atol=1e-5, rtol=1e-5), float(jnp.max(jnp.abs(out - ref)))

    print("KERNEL_OK")
</pallas_src>

<mosaic_0001>
module attributes {stable_mosaic.version = 11 : i64} {
  func.func @_avgpool2x2_kernel(%arg0: i32, %arg1: memref<16x32xf32, #tpu.memory_space<vmem>>, %arg2: memref<16x8xf32, #tpu.memory_space<vmem>>, %arg3: memref<16x8xf32, #tpu.memory_space<vmem>>) attributes {dimension_semantics = [#tpu.dimension_semantics<parallel>], iteration_bounds = array<i64: 4>, scalar_prefetch = 0 : i64, scratch_operands = 0 : i64, tpu.core_type = #tpu.core_type<tc>, window_params = [{transform_indices = @transform_0, window_bounds = array<i64: 16, 32>}, {pipeline_mode = #tpu.pipeline_mode<synchronous>, transform_indices = @transform_1, window_bounds = array<i64: 16, 8>}, {transform_indices = @transform_2, window_bounds = array<i64: 16, 8>}]} {
    %c0 = arith.constant 0 : index
    %c0_0 = arith.constant 0 : index
    %0 = vector.load %arg1[%c0, %c0_0] : memref<16x32xf32, #tpu.memory_space<vmem>>, vector<16x16xf32>
    %c0_1 = arith.constant 0 : index
    %c16 = arith.constant 16 : index
    %1 = vector.load %arg1[%c0_1, %c16] : memref<16x32xf32, #tpu.memory_space<vmem>>, vector<16x16xf32>
    %2 = arith.addf %0, %1 : vector<16x16xf32>
    %c0_2 = arith.constant 0 : index
    %c0_3 = arith.constant 0 : index
    %3 = vector.load %arg2[%c0_2, %c0_3] : memref<16x8xf32, #tpu.memory_space<vmem>>, vector<16x8xf32>
    %cst = arith.constant dense<0.000000e+00> : vector<16x8xf32>
    %4 = tpu.matmul %2, %3, %cst {dimension_numbers = #tpu.dot_dimension_numbers<[1], [0], [0], [1], [0, 0, 1, 1], [], []>} : vector<16x16xf32>, vector<16x8xf32>, vector<16x8xf32> -> vector<16x8xf32>
    %cst_4 = arith.constant 2.500000e-01 : f32
    %5 = vector.broadcast %cst_4 : f32 to vector<16x8xf32>
    %6 = arith.mulf %4, %5 : vector<16x8xf32>
    %c0_5 = arith.constant 0 : index
    %c0_6 = arith.constant 0 : index
    %7 = vector.load %arg3[%c0_5, %c0_6] : memref<16x8xf32, #tpu.memory_space<vmem>>, vector<16x8xf32>
    tpu.vector_store %arg3[%c0_5, %c0_6], %6 {strides = array<i32>} : memref<16x8xf32, #tpu.memory_space<vmem>>, vector<16x8xf32>,
    return
  }
  func.func @transform_0(%arg0: i32) -> (i32, i32) {
    %c0_i32 = arith.constant 0 : i32
    %c0_i32_0 = arith.constant 0 : i32
    return %arg0, %c0_i32 : i32, i32
  }
  func.func @transform_1(%arg0: i32) -> (i32, i32) {
    %c0_i32 = arith.constant 0 : i32
    %c0_i32_0 = arith.constant 0 : i32
    %c0_i32_1 = arith.constant 0 : i32
    return %c0_i32, %c0_i32_0 : i32, i32
  }
  func.func @transform_2(%arg0: i32) -> (i32, i32) {
    %c0_i32 = arith.constant 0 : i32
    %c0_i32_0 = arith.constant 0 : i32
    return %arg0, %c0_i32 : i32, i32
  }
}

</mosaic_0001>

<bundles_post_ra>
// kernel: avg_pool2d_2x2.1
= control target key start
LH: loop header
LB: loop body
LE: loop exit
PB: predicated region body
PF: predicated region fallthrough
CT: control target
= control target key end

     0   :  { %7 = vsyncpa [#allocation3], 0  ;;  %s578_s0 = inlined_call_operand.vmem [shape: f32[64,32], index: 0, kind: input, shape index: {}]   ;;  %s579_s1 = inlined_call_operand.vmem [shape: f32[16,8], index: 1, kind: input, shape index: {}]   ;;  %s580_s2 = inlined_call_operand.hbm [shape: f32[64,8], index: 2, kind: output, shape index: {}]  }
   0x1   :  { %9 = vsyncpa [#allocation3 + $0x1], 0  ;;  %s471_s9 = smov 0   ;;  %s473_s10 = smov 0  }
   0x2   :  { %s475_s11 = smov 0   ;;  %s477_s12 = smov 0  }
   0x3 LB: > { %s492_s13 = sadd.s32 4294967295, %s450_s12   ;;  %s322_s14 = sadd.s32 4294967294, %s450_s12   ;;  %s450_s12 = sphi %s477_s12, %s586_s12   ;;  %s446_s11 = sphi %s475_s11, %s585_s11   ;;  %s442_s10 = sphi %s473_s10, %s584_s10   ;;  %s438_s9 = sphi %s471_s9, %s583_s9  }
   0x4   : > { %s496_s15 = sadd.s32 1, %s450_s12   ;;  %s69_s16 = sadd.s32 1, %s446_s11 }
   0x5   : > { %s66_s17 = ssub.s32 %s450_s12, %s496_s15  ;;  %p79_p0 = scmp.ne.s32.totalorder %s446_s11, %s442_s10 }
   0x6   : > { %p67_p1 = scmp.eq.s32.totalorder %s66_s17, 0  ;;  %p80_p2 = scmp.eq.s32.totalorder %s492_s13, 3 }
   0x7   : > { %p85_p3 = scmp.ne.s32.totalorder %s442_s10, %s438_s9  ;;  %p86_p4 = scmp.eq.s32.totalorder %s322_s14, 3 }
   0x8   : > { %s507_s18 = scalar_select %p67_p1, %s446_s11, %s69_s16  }
   0x9   : > { %p509_p5 = por %p80_p2, %p79_p0  ;;  %p513_p6 = por %p86_p4, %p85_p3 }
   0xa   : > { %p325_p7 = scmp.ge.s32.totalorder %s450_s12, 1  ;;  %p116_p8 = scmp.lt.s32.totalorder %s450_s12, 5 }
   0xc   : > { %p117_p9 = pnand %p325_p7, %p116_p8 }
   0xd   : > { %s327_s21 = sshll.u32 (!%p117_p9), %s492_s13, 1  ;;  %s452_s30 = smov (!%p117_p9), 112  }
   0xe   : > { %120 = sbr.rel (%p117_p9) target bundleno = 355 (0x163), region = 28  ;;  %p139_p10 = scmp.lt.s32.totalorder (!%p117_p9), %s327_s21, 7 }
   0xf   : > { %s135_s3 = sand.u32 (!%p117_p9), 1, %s442_s10   ;;  %s336_s7 = sshll.u32 (!%p117_p9), %s492_s13, 8 }
  0x10   : > { %s326_s4 = sshll.u32 (!%p117_p9), %s135_s3, 4  ;;  %s536_s16 = scalar_lea.hbm (!%p117_p9), %s580_s2, %s336_s7 }
  0x11   : > { %s137_s5 = scalar_lea.vmem (!%p117_p9), [#allocation2], %s326_s4  ;;  %s538_s17 = scalar_lea.sflag (!%p117_p9), [#allocation3], %s135_s3 }
  0x12   : > { %s260_s6 = sshll.u32 (!%p117_p9), %s137_s5, 4  ;;  %s531_s6 = int_to_ptr.vmem [resolvable:$true] %s260_s6 }
  0x13   : > { %v158_v0 = vld [vmem:[%s579_s1 + $0x8] sm:$0xff]  ;;  %v157_v1 = vld [vmem:[%s579_s1] sm:$0xff]  ;;  %s588_s21 = smov (!%p139_p10, %s327_s21), 7  ;;  %vm159_vm0 = vcmask 130048   ;;  %vm243_vm1 = vcmask 64512   ;;  %s390_s13 = scalar_lea.vmem %s531_s6, 256 }
  0x14   : > { %341 = vmatprep.subr.mxu0 %v158_v0  ;;  %s328_s26 = sshll.u32 %s588_s21, 3  ;;  %p391_p11 = scmp.ne.s32.totalorder %s531_s6, %s390_s13 }
  0x15   : > { %342 = vmatpush3.msra.mxu0 %v158_v0  ;;  %s142_s29 = scalar_lea.vmem %s578_s0, %s328_s26  ;;  %s453_s21 = smov [#allocation2]  }
  0x16   : > { %343 = vmatprep.subr.mxu0 %v157_v1  ;;  %v145_v2 = vld [vmem:[%s142_s29] sm:$0xff]  ;;  %v146_v3 = vld [vmem:[%s142_s29 + $0x8] sm:$0xff]  ;;  %p392_p12 = pnand %p391_p11, %p509_p5  ;;  %s394_s22 = sshll.u32 %s453_s21, 4  ;;  %s395_s22 = int_to_ptr.vmem [resolvable:$false] %s394_s22 }
  0x17   : > { %344 = vmatpush3.msra.mxu0 %v157_v1  ;;  %149 = vrot.lane.b32.xlu0 %v145_v2, %s452_s30  ;;  %s396_s23 = scalar_lea.vmem %s395_s22, 512  ;;  %p397_p0 = scmp.lt.s32.totalorder %s531_s6, %s395_s22 }
  0x18   : > { %p393_p13 = pneg %p392_p12  ;;  %p398_p1 = scmp.lt.s32.totalorder %s396_s23, %s390_s13 }
  0x1a   : > { %p399_p2 = por %p398_p1, %p397_p0 }
  0x1b   : > { %151 = vrot.lane.b32.xlu0 %v146_v3, %s452_s30 }
  0x1c   : > { %p400_p3 = pnand %p399_p2, %p393_p13 }
  0x89   : > { %v150_v4 = vpop.permute.xlu0 %149 }
  0x8a   : > { %v155_v5 = vadd.f32 %v150_v4, %v145_v2 }
  0x8c   : > { %345 = vmatprep.mubr.msk.f32.mxu0 %vm159_vm0, %v155_v5 }
  0x8d   : > { %v152_v6 = vpop.permute.xlu0 %151 }
  0x8e   : > { %v156_v7 = vadd.f32 %v152_v6, %v146_v3 }
  0x90   : > { %346 = vmatmul.mubr.msk.f32.vlgmr.msra.gmra.mxu0 %vm159_vm0, %v156_v7 }
 0x150   : > { %v347_v8 = vpop.f32.mrf.mxu0 }
 0x151   : > { %v242_v9 = vmul.f32 0.25, %v347_v8 }
 0x152   : > { %v232_v10 = vpop.f32.mrf.mxu0 }
 0x153   : > { %245 = vst.msk [vmem:[%s137_s5 + $0x8] sm:$0xff] %vm243_vm1, %v242_v9  ;;  %v241_v11 = vmul.f32 0.25, %v232_v10 }
 0x155   : > { %244 = vst.msk [vmem:[%s137_s5] sm:$0xff] %vm243_vm1, %v241_v11 }
 0x156   : > { %403 = shalt.err (!%p400_p3)
}
 0x157   : > { %s404_s24 = scalar_lea.hbm %s536_s16, 256  ;;  %s408_s27 = scalar_lea.hbm %s580_s2, 1024 }
 0x158   : > { %p405_p4 = scmp.ne.s32.totalorder %s536_s16, %s404_s24  ;;  %p409_p9 = scmp.lt.s32.totalorder %s536_s16, %s580_s2 }
 0x159   : > { %p410_p10 = scmp.lt.s32.totalorder %s408_s27, %s404_s24 }
 0x15a   : > { %p406_p7 = pnand %p405_p4, %p509_p5 }
 0x15b   : > { %p411_p11 = por %p410_p10, %p409_p9 }
 0x15c   : > { %p407_p8 = pneg %p406_p7 }
 0x15e   : > { %p412_p12 = pnand %p411_p11, %p407_p8 }
 0x160   : > { %415 = shalt.err (!%p412_p12)
}
 0x161   : > { %s454_s30 = smov 128   ;;  %s455_s3 = smov 8  }
 0x162   : > { %348 = dma.vmem_to_hbm [thread:$0]  (%p509_p5), %s531_s6, 256, %s536_s16, %s538_s17, %s454_s30, %s454_s30, %s455_s3  }
 0x163 PF: > { %p354_p13 = scmp.ge.s32.totalorder %s450_s12, 2  ;;  %s275_s4 = sand.u32 1, %s438_s9  }
 0x164   : > { %s276_s5 = scalar_lea.sflag [#allocation3], %s275_s4 }
 0x165   : > { %p351_p0 = pnand %p354_p13, %p513_p6 }
 0x167   : > { %p352_p1 = pneg %p351_p0 }
 0x169   : > { %433 = dma.done.wait (%p352_p1), %s276_s5, 256  }
 0x16a   : > { %435 = vsyncadd (%p352_p1), %s276_s5, 4294967040  ;;  %p12_p2 = scmp.ge.s32.totalorder %s496_s15, 6   ;;  %s583_s9 = smov %s442_s10 }
 0x16b   : > { %s584_s10 = smov %s446_s11  ;;  %s585_s11 = smov %s507_s18 }
 0x16c   : > { %s586_s12 = smov %s496_s15  ;;  %14 = sbr.rel (!%p12_p2) target bundleno = 3 (0x3), region = 63 }
 0x171   :  { %281 = vsyncpa [#allocation3], 1 }
 0x172   :  { %283 = vsyncpa [#allocation3 + $0x1], 1 }

</bundles_post_ra>
